<compile_context>
chip_gen: v5e
topology: v5e:2x2
jax: 0.10.0
libtpu: 0.0.40
codegen_flags: <defaults>
</compile_context>

<pallas_src>
import jax
import jax.numpy as jnp
from jax.experimental import pallas as pl
from jax.experimental.pallas import tpu as pltpu


_MAX_NC_BLK = 256
_HW_PARAMS_CACHE = {}


def _round_up(x, m):
    return ((x + m - 1) // m) * m


def _cdiv(a, b):
    return -(-a // b)


def _hw_params():
    """Per-generation budgets. Conservative (v7x-class) fallback if query fails."""
    if "p" in _HW_PARAMS_CACHE:
        return _HW_PARAMS_CACHE["p"]
    vmem = None
    try:
        info = pltpu.get_tpu_info()
        for name in ("vmem_capacity_bytes", "vmem_size_bytes", "vmem_bytes"):
            v = getattr(info, name, None)
            if v:
                vmem = int(v)
                break
    except Exception:
        vmem = None
    if vmem is None or vmem <= 80 * 1024 * 1024:
        # v7x-class: 64 MiB VMEM per TC, 2 TCs share HBM -> small tiles, split rows.
        p = dict(input_budget=12 * 1024 * 1024,
                 vmem_limit=40 * 1024 * 1024,
                 max_tile=4096,
                 multi_tc=True)
    else:
        # v5e / v6e: 128 MiB VMEM, single TC -> bigger tiles amortize step overhead.
        p = dict(input_budget=32 * 1024 * 1024,
                 vmem_limit=64 * 1024 * 1024,
                 max_tile=8192,
                 multi_tc=False)
    _HW_PARAMS_CACHE["p"] = p
    return p


def _make_dice_kernel(cols, nc_blk, tile, acc_w, need_col_mask):
    """Kernel producing lane-dense per-row partial sums.

    Grid: (row_blocks [parallel], hw_blocks [arbitrary / reduction]).
      x_ref, t_ref          : (nc_blk, tile) VMEM tiles in native dtype.
      inter_ref, denom_ref  : (nc_blk, acc_w) f32 output-resident accumulators:
                              per-lane partials of sum(x*t) and sum(x)+sum(t).
    """
    n_slabs = tile // acc_w

    def kernel(x_ref, t_ref, inter_ref, denom_ref):
        k = pl.program_id(1)

        @pl.when(k == 0)
        def _init():
            inter_ref[...] = jnp.zeros_like(inter_ref)
            denom_ref[...] = jnp.zeros_like(denom_ref)

        if need_col_mask:
            lane = jax.lax.broadcasted_iota(jnp.int32, (nc_blk, acc_w), 1)
            col0 = k * tile + lane  # global column index of slab 0 lanes

        pi = None
        pd = None
        for b in range(n_slabs):
            sl = slice(b * acc_w, (b + 1) * acc_w)
            xs = x_ref[:, sl].astype(jnp.float32)
            ts = t_ref[:, sl].astype(jnp.float32)
            if need_col_mask:
                m = (col0 + b * acc_w) < cols
                xs = jnp.where(m, xs, 0.0)
                ts = jnp.where(m, ts, 0.0)
            if pi is None:
                pi = xs * ts
                pd = xs + ts
            else:
                pi = pi + xs * ts
                pd = pd + xs + ts

        inter_ref[...] += pi
        denom_ref[...] += pd

    return kernel


def _dice_partial_sums(x, t):
    """x, t: (rows, cols). Returns (inter, denom): f32 (rows,) each,
    inter[r] = sum_c x[r,c]*t[r,c], denom[r] = sum_c x[r,c] + sum_c t[r,c]."""
    rows, cols = int(x.shape[0]), int(x.shape[1])
    params = _hw_params()
    itembytes = jnp.dtype(x.dtype).itemsize + jnp.dtype(t.dtype).itemsize

    # --- row blocking: never exceed the row count; >=2 blocks on 2-TC parts.
    if rows < 8:
        nc_blk = rows
    else:
        rows_floor8 = (rows // 8) * 8
        min_row_blocks = 2 if (params["multi_tc"] and rows >= 16) else 1
        n_blocks = max(min_row_blocks, _cdiv(rows, _MAX_NC_BLK))
        nc_blk = _round_up(_cdiv(rows, n_blocks), 8)
        nc_blk = max(8, min(nc_blk, rows_floor8, _MAX_NC_BLK))
    grid_rows = _cdiv(rows, nc_blk)
    rows_out = grid_rows * nc_blk

    # --- HW tiling: largest lane-aligned tile within the double-buffer budget,
    #     never exceeding the real column count.
    if cols < 128:
        tile = cols
    else:
        cols_floor128 = (cols // 128) * 128
        budget_tile = params["input_budget"] // (2 * nc_blk * itembytes)
        tile = min(params["max_tile"], cols_floor128, budget_tile)
        tile = max(128, (tile // 128) * 128)
    grid_cols = _cdiv(cols, tile)
    acc_w = min(tile, 128)
    need_col_mask = (cols % tile) != 0

    kernel = _make_dice_kernel(cols, nc_blk, tile, acc_w, need_col_mask)

    cost = pl.CostEstimate(
        flops=3 * rows * cols,
        transcendentals=0,
        bytes_accessed=rows * cols * itembytes + 2 * rows_out * acc_w * 4,
    )

    inter_p, denom_p = pl.pallas_call(
        kernel,
        out_shape=(
            jax.ShapeDtypeStruct((rows_out, acc_w), jnp.float32),
            jax.ShapeDtypeStruct((rows_out, acc_w), jnp.float32),
        ),
        grid_spec=pltpu.PrefetchScalarGridSpec(
            num_scalar_prefetch=0,
            grid=(grid_rows, grid_cols),
            in_specs=[
                pl.BlockSpec((nc_blk, tile), lambda i, k: (i, k)),
                pl.BlockSpec((nc_blk, tile), lambda i, k: (i, k)),
            ],
            out_specs=[
                pl.BlockSpec((nc_blk, acc_w), lambda i, k: (i, 0)),
                pl.BlockSpec((nc_blk, acc_w), lambda i, k: (i, 0)),
            ],
        ),
        compiler_params=pltpu.CompilerParams(
            dimension_semantics=("parallel", "arbitrary"),
            vmem_limit_bytes=params["vmem_limit"],
        ),
        cost_estimate=cost,
    )(x, t)

    # Final 128 -> 1 reduce once, on a tiny array (padded rows are sliced off).
    inter = jnp.sum(inter_p[:rows], axis=1)
    denom = jnp.sum(denom_p[:rows], axis=1)
    return inter, denom


def multiclass_dice_loss(inp, target, weights=None):
    """JAX/Pallas equivalent of MulticlassDiceLoss().forward(input, target, weights)."""
    N, C = int(inp.shape[0]), int(inp.shape[1])
    hw = 1
    for d in inp.shape[2:]:
        hw *= int(d)
    nc = N * C

    # Keep native dtype (kernel casts VMEM tiles to f32): bf16 inputs DMA at half bytes.
    x = inp.reshape(nc, hw)
    t = target.reshape(nc, hw)

    # Tiny N*C (< 8 rows): fold part of HW into the row axis (contiguous, copy-free
    # reshape) so (8,128) vregs are not mostly padding rows.
    fold = 1
    if nc < 8:
        for f in (8, 4, 2):
            if hw % f == 0:
                fold = f
                break
    if fold > 1:
        x = x.reshape(nc * fold, hw // fold)
        t = t.reshape(nc * fold, hw // fold)

    inter, denom = _dice_partial_sums(x, t)              # (nc*fold,), (nc*fold,)
    if fold > 1:
        inter = inter.reshape(nc, fold).sum(axis=1)
        denom = denom.reshape(nc, fold).sum(axis=1)

    smooth = 1.0
    inter = inter.reshape(N, C)
    denom = denom.reshape(N, C)

    # SoftDiceLoss per class: 1 - (1/N) * sum_n [ 2*(inter + 1) / (sx + st + 1) ]
    dice = 2.0 * (inter + smooth) / (denom + smooth)          # (N, C)
    per_class_loss = 1.0 - jnp.sum(dice, axis=0) / float(N)   # (C,)
    if weights is not None:
        per_class_loss = per_class_loss * weights.astype(jnp.float32)
    return jnp.sum(per_class_loss)


def _multiclass_dice_loss_ref(inp, target, weights=None):
    """Pure-JAX reference mirroring the PyTorch forward, for verification."""
    N, C = inp.shape[0], inp.shape[1]
    total = 0.0
    for i in range(C):
        xi = inp[:, i].reshape(N, -1).astype(jnp.float32)
        ti = target[:, i].reshape(N, -1).astype(jnp.float32)
        inter = jnp.sum(xi * ti, axis=1)
        denom = jnp.sum(xi, axis=1) + jnp.sum(ti, axis=1)
        loss = 2.0 * (inter + 1.0) / (denom + 1.0)
        loss = 1.0 - jnp.sum(loss) / N
        if weights is not None:
            loss = loss * weights[i]
        total = total + loss
    return total


if __name__ == "__main__":
    key = jax.random.PRNGKey(0)
    k1, k2, k3, k4 = jax.random.split(key, 4)

    # Main check: soft class probabilities as "input", one-hot labels as "target".
    N, C, H, W = 2, 4, 16, 16
    logits = jax.random.normal(k1, (N, C, H, W), dtype=jnp.float32)
    inp = jax.nn.softmax(logits, axis=1)
    labels = jnp.argmax(jax.random.normal(k2, (N, C, H, W), dtype=jnp.float32), axis=1)
    target = jax.nn.one_hot(labels, C, axis=1, dtype=jnp.float32)   # (N, C, H, W)

    out = jax.block_until_ready(multiclass_dice_loss(inp, target))
    ref = jax.block_until_ready(_multiclass_dice_loss_ref(inp, target))
    assert jnp.allclose(out, ref, rtol=1e-5, atol=1e-5), (out, ref)

    # Weighted variant.
    weights = jnp.asarray([0.1, 0.2, 0.3, 0.4], dtype=jnp.float32)
    out_w = jax.block_until_ready(multiclass_dice_loss(inp, target, weights))
    ref_w = jax.block_until_ready(_multiclass_dice_loss_ref(inp, target, weights))
    assert jnp.allclose(out_w, ref_w, rtol=1e-5, atol=1e-5), (out_w, ref_w)

    # Odd spatial size + tiny N*C exercises the row-folding and tile=cols (<128) paths.
    N2, C2, H2, W2 = 1, 3, 10, 10
    logits2 = jax.random.normal(k3, (N2, C2, H2, W2), dtype=jnp.float32)
    inp2 = jax.nn.softmax(logits2, axis=1)
    labels2 = jnp.argmax(logits2, axis=1)
    target2 = jax.nn.one_hot(labels2, C2, axis=1, dtype=jnp.float32)
    out2 = jax.block_until_ready(multiclass_dice_loss(inp2, target2))
    ref2 = jax.block_until_ready(_multiclass_dice_loss_ref(inp2, target2))
    assert jnp.allclose(out2, ref2, rtol=1e-5, atol=1e-5), (out2, ref2)

    # Non-divisible HW (>=128) + multiple row blocks exercises the in-kernel
    # column mask and the ragged last row/col blocks.
    N3, C3, H3, W3 = 4, 8, 17, 19
    logits3 = jax.random.normal(k4, (N3, C3, H3, W3), dtype=jnp.float32)
    inp3 = jax.nn.softmax(logits3, axis=1)
    labels3 = jnp.argmax(logits3, axis=1)
    target3 = jax.nn.one_hot(labels3, C3, axis=1, dtype=jnp.float32)
    out3 = jax.block_until_ready(multiclass_dice_loss(inp3, target3))
    ref3 = jax.block_until_ready(_multiclass_dice_loss_ref(inp3, target3))
    assert jnp.allclose(out3, ref3, rtol=1e-5, atol=1e-5), (out3, ref3)

    print("KERNEL_OK")
</pallas_src>

<mosaic_0001>
module attributes {stable_mosaic.version = 11 : i64} {
  func.func @kernel(%arg0: i32, %arg1: i32, %arg2: memref<8x256xf32, #tpu.memory_space<vmem>>, %arg3: memref<8x256xf32, #tpu.memory_space<vmem>>, %arg4: memref<8x128xf32, #tpu.memory_space<vmem>>, %arg5: memref<8x128xf32, #tpu.memory_space<vmem>>) attributes {dimension_semantics = [#tpu.dimension_semantics<parallel>, #tpu.dimension_semantics<arbitrary>], iteration_bounds = array<i64: 1, 1>, scalar_prefetch = 0 : i64, scratch_operands = 0 : i64, tpu.core_type = #tpu.core_type<tc>, window_params = [{transform_indices = @transform_0, window_bounds = array<i64: 8, 256>}, {transform_indices = @transform_1, window_bounds = array<i64: 8, 256>}, {transform_indices = @transform_2, window_bounds = array<i64: 8, 128>}, {transform_indices = @transform_3, window_bounds = array<i64: 8, 128>}]} {
    %c0_i32 = arith.constant 0 : i32
    %0 = arith.cmpi eq, %arg1, %c0_i32 : i32
    %1 = arith.extui %0 : i1 to i32
    %c0_i32_0 = arith.constant 0 : i32
    %2 = arith.cmpi ne, %1, %c0_i32_0 : i32
    scf.if %2 {
      %cst = arith.constant 0.000000e+00 : f32
      %19 = vector.broadcast %cst : f32 to vector<8x128xf32>
      %c0_15 = arith.constant 0 : index
      %c0_16 = arith.constant 0 : index
      %20 = vector.load %arg4[%c0_15, %c0_16] : memref<8x128xf32, #tpu.memory_space<vmem>>, vector<8x128xf32>
      tpu.vector_store %arg4[%c0_15, %c0_16], %19 {strides = array<i32>} : memref<8x128xf32, #tpu.memory_space<vmem>>, vector<8x128xf32>,
      %cst_17 = arith.constant 0.000000e+00 : f32
      %21 = vector.broadcast %cst_17 : f32 to vector<8x128xf32>
      %c0_18 = arith.constant 0 : index
      %c0_19 = arith.constant 0 : index
      %22 = vector.load %arg5[%c0_18, %c0_19] : memref<8x128xf32, #tpu.memory_space<vmem>>, vector<8x128xf32>
      tpu.vector_store %arg5[%c0_18, %c0_19], %21 {strides = array<i32>} : memref<8x128xf32, #tpu.memory_space<vmem>>, vector<8x128xf32>,
    } else {
    }
    %c0 = arith.constant 0 : index
    %c0_1 = arith.constant 0 : index
    %3 = vector.load %arg2[%c0, %c0_1] : memref<8x256xf32, #tpu.memory_space<vmem>>, vector<8x128xf32>
    %c0_2 = arith.constant 0 : index
    %c0_3 = arith.constant 0 : index
    %4 = vector.load %arg3[%c0_2, %c0_3] : memref<8x256xf32, #tpu.memory_space<vmem>>, vector<8x128xf32>
    %5 = arith.mulf %3, %4 : vector<8x128xf32>
    %6 = arith.addf %3, %4 : vector<8x128xf32>
    %c0_4 = arith.constant 0 : index
    %c128 = arith.constant 128 : index
    %7 = vector.load %arg2[%c0_4, %c128] : memref<8x256xf32, #tpu.memory_space<vmem>>, vector<8x128xf32>
    %c0_5 = arith.constant 0 : index
    %c128_6 = arith.constant 128 : index
    %8 = vector.load %arg3[%c0_5, %c128_6] : memref<8x256xf32, #tpu.memory_space<vmem>>, vector<8x128xf32>
    %9 = arith.mulf %7, %8 : vector<8x128xf32>
    %10 = arith.addf %5, %9 : vector<8x128xf32>
    %11 = arith.addf %6, %7 : vector<8x128xf32>
    %12 = arith.addf %11, %8 : vector<8x128xf32>
    %c0_7 = arith.constant 0 : index
    %c0_8 = arith.constant 0 : index
    %13 = vector.load %arg4[%c0_7, %c0_8] : memref<8x128xf32, #tpu.memory_space<vmem>>, vector<8x128xf32>
    %14 = arith.addf %13, %10 : vector<8x128xf32>
    %c0_9 = arith.constant 0 : index
    %c0_10 = arith.constant 0 : index
    %15 = vector.load %arg4[%c0_9, %c0_10] : memref<8x128xf32, #tpu.memory_space<vmem>>, vector<8x128xf32>
    tpu.vector_store %arg4[%c0_9, %c0_10], %14 {strides = array<i32>} : memref<8x128xf32, #tpu.memory_space<vmem>>, vector<8x128xf32>,
    %c0_11 = arith.constant 0 : index
    %c0_12 = arith.constant 0 : index
    %16 = vector.load %arg5[%c0_11, %c0_12] : memref<8x128xf32, #tpu.memory_space<vmem>>, vector<8x128xf32>
    %17 = arith.addf %16, %12 : vector<8x128xf32>
    %c0_13 = arith.constant 0 : index
    %c0_14 = arith.constant 0 : index
    %18 = vector.load %arg5[%c0_13, %c0_14] : memref<8x128xf32, #tpu.memory_space<vmem>>, vector<8x128xf32>
    tpu.vector_store %arg5[%c0_13, %c0_14], %17 {strides = array<i32>} : memref<8x128xf32, #tpu.memory_space<vmem>>, vector<8x128xf32>,
    return
  }
  func.func @transform_0(%arg0: i32, %arg1: i32) -> (i32, i32) {
    %c0_i32 = arith.constant 0 : i32
    return %arg0, %arg1 : i32, i32
  }
  func.func @transform_1(%arg0: i32, %arg1: i32) -> (i32, i32) {
    %c0_i32 = arith.constant 0 : i32
    return %arg0, %arg1 : i32, i32
  }
  func.func @transform_2(%arg0: i32, %arg1: i32) -> (i32, i32) {
    %c0_i32 = arith.constant 0 : i32
    %c0_i32_0 = arith.constant 0 : i32
    return %arg0, %c0_i32 : i32, i32
  }
  func.func @transform_3(%arg0: i32, %arg1: i32) -> (i32, i32) {
    %c0_i32 = arith.constant 0 : i32
    %c0_i32_0 = arith.constant 0 : i32
    return %arg0, %c0_i32 : i32, i32
  }
}

</mosaic_0001>

<bundles_post_ra>
// kernel: tpu_custom_call.1
= control target key start
LH: loop header
LB: loop body
LE: loop exit
PB: predicated region body
PF: predicated region fallthrough
CT: control target
= control target key end

     0   :  { %9 = vsyncpa [#allocation3], 0  ;;  %s244_s0 = inlined_call_operand.hbm [shape: f32[8,256], index: 0, kind: input, shape index: {}]   ;;  %s245_s1 = inlined_call_operand.hbm [shape: f32[8,256], index: 1, kind: input, shape index: {}]   ;;  %s246_s2 = inlined_call_operand.hbm [shape: f32[8,128], index: 2, kind: output, shape index: {0}]   ;;  %s247_s3 = inlined_call_operand.hbm [shape: f32[8,128], index: 3, kind: output, shape index: {1}]  }
   0x1   :  { %10 = vsyncpa [#allocation6], 0 }
   0x2   :  { %11 = vsyncpa [#allocation4], 0 }
   0x3   :  { %12 = vsyncpa [#allocation9], 0  ;;  %s18_s14 = sshll.u32 %s244_s0, 4  ;;  %s208_s15 = smov [#allocation2]   ;;  %s19_s14 = int_to_ptr.hbm [resolvable:$true] %s18_s14 }
   0x4   :  { %s20_s16 = sshll.u32 %s208_s15, 4  ;;  %s29_s19 = sshll.u32 %s245_s1, 4  ;;  %s21_s16 = int_to_ptr.vmem [resolvable:$true] %s20_s16  ;;  %s30_s19 = int_to_ptr.hbm [resolvable:$true] %s29_s19 }
   0x5   :  { %23 = dma.hbm_to_vmem [thread:$0]  %s19_s14, 256, %s21_s16, [#allocation3]  }
   0x6   :  { %s209_s20 = smov [#allocation5]  }
   0x7   :  { %s31_s21 = sshll.u32 %s209_s20, 4  ;;  %s32_s21 = int_to_ptr.vmem [resolvable:$true] %s31_s21 }
   0x8   :  { %34 = dma.hbm_to_vmem [thread:$0]  %s30_s19, 256, %s32_s21, [#allocation6]  }
   0x9   :  { %200 = dma.done.wait [#allocation3], 256  }
   0xa   :  { %201 = vsyncadd [#allocation3], 4294967040 }
   0xb   :  { %202 = dma.done.wait [#allocation6], 256  }
   0xc   :  { %203 = vsyncadd [#allocation6], 4294967040  ;;  %v49_v0 = vld [vmem:[#allocation2] sm:$0xff]  ;;  %v50_v1 = vld [vmem:[#allocation5] sm:$0xff]  ;;  %s210_s0 = smov [#allocation7]   ;;  %s72_s24 = sshll.u32 %s246_s2, 4  ;;  %s73_s24 = int_to_ptr.hbm [resolvable:$true] %s72_s24 }
   0xd   :  { %v53_v2 = vld [vmem:[#allocation2 + $0x8] sm:$0xff]  ;;  %v51_v3 = vmul.f32 %v50_v1, %v49_v0  ;;  %v54_v4 = vld [vmem:[#allocation5 + $0x8] sm:$0xff]  ;;  %v52_v5 = vadd.f32 %v50_v1, %v49_v0  ;;  %s70_s1 = sshll.u32 %s210_s0, 4  ;;  %s211_s25 = smov [#allocation8]   ;;  %s71_s1 = int_to_ptr.vmem [resolvable:$true] %s70_s1 }
   0xe   :  { %v55_v6 = vmul.f32 %v54_v4, %v53_v2  ;;  %s81_s26 = sshll.u32 %s211_s25, 4  ;;  %s83_s29 = sshll.u32 %s247_s3, 4  ;;  %s82_s26 = int_to_ptr.vmem [resolvable:$true] %s81_s26  ;;  %s84_s29 = int_to_ptr.hbm [resolvable:$true] %s83_s29 }
   0xf   :  { %v57_v7 = vadd.f32 %v53_v2, %v52_v5 }
  0x10   :  { %v56_v8 = vadd.f32 %v55_v6, %v51_v3 }
  0x11   :  { %v58_v9 = vadd.f32 %v57_v7, %v54_v4 }
  0x12   :  { %61 = vst [vmem:[#allocation7] sm:$0xff] %v56_v8 }
  0x13   :  { %64 = vst [vmem:[#allocation8] sm:$0xff] %v58_v9  ;;  %75 = dma.vmem_to_hbm [thread:$0]  %s71_s1, 128, %s73_s24, [#allocation4]  }
  0x14   :  { %86 = dma.vmem_to_hbm [thread:$0]  %s82_s26, 128, %s84_s29, [#allocation9]  }
  0x15   :  { %204 = dma.done.wait [#allocation4], 128  }
  0x16   :  { %205 = vsyncadd [#allocation4], 4294967168 }
  0x17   :  { %206 = dma.done.wait [#allocation9], 128  }
  0x18   :  { %207 = vsyncadd [#allocation9], 4294967168 }
  0x19   :  { %95 = vsyncpa [#allocation3], 1 }
  0x1a   :  { %96 = vsyncpa [#allocation6], 1 }
  0x1b   :  { %97 = vsyncpa [#allocation4], 1 }
  0x1c   :  { %98 = vsyncpa [#allocation9], 1 }

</bundles_post_ra>
